<compile_context>
chip_gen: v7x
topology: tpu7x:2x2x1
jax: 0.10.0
libtpu: 0.0.40
codegen_flags: <defaults>
</compile_context>

<pallas_src>
import functools

import jax
import jax.numpy as jnp
from jax.experimental import pallas as pl
from jax.experimental.pallas import tpu as pltpu  # noqa: F401  (TPU backend)

_LANE = 128
_BN_EPS = 1e-5


def _round_up(n, m):
    return ((n + m - 1) // m) * m


def _pad_last(a, target):
    pad = target - a.shape[-1]
    if pad <= 0:
        return a
    widths = [(0, 0)] * (a.ndim - 1) + [(0, pad)]
    return jnp.pad(a, widths)


def _pad2(a, rows, cols):
    return jnp.pad(a, ((0, rows - a.shape[0]), (0, cols - a.shape[1])))


def _full_spec(shape):
    # Whole (already lane-padded) array as one block; everything fits in VMEM.
    return pl.BlockSpec(shape, lambda: (0,) * len(shape))


# ------------------------------ fused kernel --------------------------------

def _make_fused_mlp_kernel(num_hidden, inv_batch):
    """Kernel over refs: x, [(w, gamma, beta)] * num_hidden, w_out, b_out, o."""

    def kernel(*refs):
        x_ref = refs[0]
        o_ref = refs[-1]
        h = x_ref[...]                       # activation stays on-chip all the way
        idx = 1
        for _ in range(num_hidden):
            w_ref, g_ref, be_ref = refs[idx:idx + 3]
            idx += 3
            # MXU matmul with f32 accumulation. Hidden-layer Linear bias is
            # intentionally omitted: training-mode BatchNorm subtracts the
            # batch mean, which cancels any per-feature constant exactly.
            y = jnp.dot(h, w_ref[...], preferred_element_type=jnp.float32)
            # BatchNorm1d (training mode: batch stats, biased var, eps=1e-5),
            # one-pass statistics, folded into a single scale/shift FMA.
            mean = jnp.sum(y, axis=0, keepdims=True) * inv_batch
            msq = jnp.sum(y * y, axis=0, keepdims=True) * inv_batch
            var = jnp.maximum(msq - mean * mean, 0.0)
            scale = g_ref[...] * jax.lax.rsqrt(var + _BN_EPS)   # EUP rsqrt
            shift = be_ref[...] - mean * scale
            h = jnp.maximum(y * scale + shift, 0.0)             # BN + ReLU, one FMA + max
        w_ref, b_ref = refs[idx], refs[idx + 1]
        y = jnp.dot(h, w_ref[...], preferred_element_type=jnp.float32)
        o_ref[...] = (y + b_ref[...]).astype(o_ref.dtype)

    return kernel


def _fused_mlp_call(x_p, hidden_layers, final_w, final_b):
    batch = x_p.shape[0]
    out_pad = final_w.shape[1]

    inputs = [x_p]
    in_specs = [_full_spec(x_p.shape)]
    for layer in hidden_layers:                      # (w, gamma, beta)
        for a in layer:
            inputs.append(a)
            in_specs.append(_full_spec(a.shape))
    inputs += [final_w, final_b]
    in_specs += [_full_spec(final_w.shape), _full_spec(final_b.shape)]

    return pl.pallas_call(
        _make_fused_mlp_kernel(len(hidden_layers), 1.0 / float(batch)),
        out_shape=jax.ShapeDtypeStruct((batch, out_pad), jnp.float32),
        grid=(),
        in_specs=in_specs,
        out_specs=_full_spec((batch, out_pad)),
    )(*inputs)


# ------------------------------- parameters ---------------------------------

def init_mlp_params(key, num_layers, input_dim, hidden_dim, output_dim):
    """Unpadded params mirroring the PyTorch module (weights stored (in, out))."""
    if num_layers < 1:
        raise ValueError("number of layers should be positive!")

    def init_linear(k, fan_in, fan_out):
        kw, kb = jax.random.split(k)
        bound = 1.0 / float(fan_in) ** 0.5
        w = jax.random.uniform(kw, (fan_in, fan_out), jnp.float32, -bound, bound)
        b = jax.random.uniform(kb, (1, fan_out), jnp.float32, -bound, bound)
        return w, b

    params = {"linears": [], "batch_norms": []}
    if num_layers == 1:
        params["linears"].append(init_linear(key, input_dim, output_dim))
        return params

    dims = [input_dim] + [hidden_dim] * (num_layers - 1) + [output_dim]
    keys = jax.random.split(key, num_layers)
    for i in range(num_layers):
        params["linears"].append(init_linear(keys[i], dims[i], dims[i + 1]))
    for _ in range(num_layers - 1):
        # PyTorch BatchNorm1d init: weight = 1, bias = 0
        params["batch_norms"].append(
            (jnp.ones((1, hidden_dim), jnp.float32),
             jnp.zeros((1, hidden_dim), jnp.float32)))
    return params


def pad_mlp_params(params):
    """Zero-pad all feature (lane) dims to multiples of 128, once, host-side."""
    padded = {"linears": [], "batch_norms": []}
    for w, b in params["linears"]:
        in_p = _round_up(w.shape[0], _LANE)
        out_p = _round_up(w.shape[1], _LANE)
        padded["linears"].append((_pad2(w, in_p, out_p), _pad_last(b, out_p)))
    for g, be in params["batch_norms"]:
        out_p = _round_up(g.shape[1], _LANE)
        # gamma/beta MUST pad with zeros so padded columns stay exactly zero
        # through BN + ReLU and cannot contaminate real columns.
        padded["batch_norms"].append((_pad_last(g, out_p), _pad_last(be, out_p)))
    return padded


# -------------------------------- forward -----------------------------------

@functools.partial(jax.jit, static_argnums=(2,))
def mlp_forward(padded_params, x, output_dim):
    linears = padded_params["linears"]
    bns = padded_params["batch_norms"]
    in_pad = linears[0][0].shape[0]
    x_p = _pad_last(x, in_pad)               # batch axis intentionally NOT padded (BN stats)

    if len(linears) == 1:
        w, b = linears[0]
        out_p = _fused_mlp_call(x_p, [], w, b)
    else:
        # Hidden-layer biases are not passed: BN (training mode) cancels them.
        hidden = [(linears[i][0], bns[i][0], bns[i][1])
                  for i in range(len(linears) - 1)]
        w, b = linears[-1]
        out_p = _fused_mlp_call(x_p, hidden, w, b)
    return out_p[:, :output_dim]


def reference_forward(params, x):
    """Pure-JAX reference of the same forward pass (sanity check, bias included)."""
    linears = params["linears"]
    bns = params["batch_norms"]
    if len(linears) == 1:
        w, b = linears[0]
        return x @ w + b
    h = x
    for i in range(len(linears) - 1):
        w, b = linears[i]
        g, be = bns[i]
        y = h @ w + b
        mean = jnp.mean(y, axis=0, keepdims=True)
        var = jnp.mean((y - mean) ** 2, axis=0, keepdims=True)
        y = (y - mean) / jnp.sqrt(var + _BN_EPS)
        h = jnp.maximum(y * g + be, 0.0)
    w, b = linears[-1]
    return h @ w + b


# ---------------------------------- main -------------------------------------

if __name__ == "__main__":
    key = jax.random.PRNGKey(0)
    k_param, k_param1, k_x = jax.random.split(key, 3)

    # 3-layer MLP: 16 -> 32 -> 32 -> 8, batch of 8 (true batch; BN needs it).
    num_layers, batch, input_dim, hidden_dim, output_dim = 3, 8, 16, 32, 8

    params = init_mlp_params(k_param, num_layers, input_dim, hidden_dim, output_dim)
    padded = pad_mlp_params(params)
    x = jax.random.normal(k_x, (batch, input_dim), jnp.float32)

    out = jax.block_until_ready(mlp_forward(padded, x, output_dim))
    ref = reference_forward(params, x)
    assert out.shape == (batch, output_dim)
    assert jnp.allclose(out, ref, atol=1e-4, rtol=1e-4), "3-layer mismatch vs reference"

    # num_layers == 1 path (pure linear).
    params1 = init_mlp_params(k_param1, 1, input_dim, hidden_dim, output_dim)
    padded1 = pad_mlp_params(params1)
    out1 = jax.block_until_ready(mlp_forward(padded1, x, output_dim))
    ref1 = reference_forward(params1, x)
    assert out1.shape == (batch, output_dim)
    assert jnp.allclose(out1, ref1, atol=1e-4, rtol=1e-4), "1-layer mismatch vs reference"

    print("KERNEL_OK")
</pallas_src>

<mosaic_0001>
module attributes {stable_mosaic.version = 11 : i64} {
  func.func @kernel(%arg0: memref<8x128xf32, #tpu.memory_space<vmem>>, %arg1: memref<128x128xf32, #tpu.memory_space<vmem>>, %arg2: memref<1x128xf32, #tpu.memory_space<vmem>>, %arg3: memref<1x128xf32, #tpu.memory_space<vmem>>, %arg4: memref<128x128xf32, #tpu.memory_space<vmem>>, %arg5: memref<1x128xf32, #tpu.memory_space<vmem>>, %arg6: memref<1x128xf32, #tpu.memory_space<vmem>>, %arg7: memref<128x128xf32, #tpu.memory_space<vmem>>, %arg8: memref<1x128xf32, #tpu.memory_space<vmem>>, %arg9: memref<8x128xf32, #tpu.memory_space<vmem>>) attributes {dimension_semantics = [], scalar_prefetch = 0 : i64, scratch_operands = 0 : i64, tpu.core_type = #tpu.core_type<tc>} {
    %c0 = arith.constant 0 : index
    %c0_0 = arith.constant 0 : index
    %0 = vector.load %arg0[%c0, %c0_0] : memref<8x128xf32, #tpu.memory_space<vmem>>, vector<8x128xf32>
    %c0_1 = arith.constant 0 : index
    %c0_2 = arith.constant 0 : index
    %1 = vector.load %arg1[%c0_1, %c0_2] : memref<128x128xf32, #tpu.memory_space<vmem>>, vector<128x128xf32>
    %cst = arith.constant dense<0.000000e+00> : vector<8x128xf32>
    %2 = tpu.matmul %0, %1, %cst {dimension_numbers = #tpu.dot_dimension_numbers<[1], [0], [0], [1], [0, 0, 1, 1], [], []>} : vector<8x128xf32>, vector<128x128xf32>, vector<8x128xf32> -> vector<8x128xf32>
    %cst_3 = arith.constant dense<0.000000e+00> : vector<128xf32>
    %3 = vector.multi_reduction <add>, %2, %cst_3 [0] : vector<8x128xf32> to vector<128xf32>
    %4 = vector.shape_cast %3 : vector<128xf32> to vector<1x128xf32>
    %cst_4 = arith.constant 1.250000e-01 : f32
    %5 = vector.broadcast %cst_4 : f32 to vector<1x128xf32>
    %6 = arith.mulf %4, %5 : vector<1x128xf32>
    %7 = arith.mulf %2, %2 : vector<8x128xf32>
    %cst_5 = arith.constant dense<0.000000e+00> : vector<128xf32>
    %8 = vector.multi_reduction <add>, %7, %cst_5 [0] : vector<8x128xf32> to vector<128xf32>
    %9 = vector.shape_cast %8 : vector<128xf32> to vector<1x128xf32>
    %cst_6 = arith.constant 1.250000e-01 : f32
    %10 = vector.broadcast %cst_6 : f32 to vector<1x128xf32>
    %11 = arith.mulf %9, %10 : vector<1x128xf32>
    %12 = arith.mulf %6, %6 : vector<1x128xf32>
    %13 = arith.subf %11, %12 : vector<1x128xf32>
    %cst_7 = arith.constant 0.000000e+00 : f32
    %14 = vector.broadcast %cst_7 : f32 to vector<1x128xf32>
    %15 = arith.maximumf %13, %14 : vector<1x128xf32>
    %c0_8 = arith.constant 0 : index
    %c0_9 = arith.constant 0 : index
    %16 = vector.load %arg2[%c0_8, %c0_9] : memref<1x128xf32, #tpu.memory_space<vmem>>, vector<1x128xf32>
    %cst_10 = arith.constant 9.99999974E-6 : f32
    %17 = vector.broadcast %cst_10 : f32 to vector<1x128xf32>
    %18 = arith.addf %15, %17 : vector<1x128xf32>
    %19 = math.rsqrt %18 : vector<1x128xf32>
    %20 = arith.mulf %16, %19 : vector<1x128xf32>
    %c0_11 = arith.constant 0 : index
    %c0_12 = arith.constant 0 : index
    %21 = vector.load %arg3[%c0_11, %c0_12] : memref<1x128xf32, #tpu.memory_space<vmem>>, vector<1x128xf32>
    %22 = arith.mulf %6, %20 : vector<1x128xf32>
    %23 = arith.subf %21, %22 : vector<1x128xf32>
    %24 = vector.broadcast %20 : vector<1x128xf32> to vector<8x128xf32>
    %25 = arith.mulf %2, %24 : vector<8x128xf32>
    %26 = vector.broadcast %23 : vector<1x128xf32> to vector<8x128xf32>
    %27 = arith.addf %25, %26 : vector<8x128xf32>
    %cst_13 = arith.constant 0.000000e+00 : f32
    %28 = vector.broadcast %cst_13 : f32 to vector<8x128xf32>
    %29 = arith.maximumf %27, %28 : vector<8x128xf32>
    %c0_14 = arith.constant 0 : index
    %c0_15 = arith.constant 0 : index
    %30 = vector.load %arg4[%c0_14, %c0_15] : memref<128x128xf32, #tpu.memory_space<vmem>>, vector<128x128xf32>
    %cst_16 = arith.constant dense<0.000000e+00> : vector<8x128xf32>
    %31 = tpu.matmul %29, %30, %cst_16 {dimension_numbers = #tpu.dot_dimension_numbers<[1], [0], [0], [1], [0, 0, 1, 1], [], []>} : vector<8x128xf32>, vector<128x128xf32>, vector<8x128xf32> -> vector<8x128xf32>
    %cst_17 = arith.constant dense<0.000000e+00> : vector<128xf32>
    %32 = vector.multi_reduction <add>, %31, %cst_17 [0] : vector<8x128xf32> to vector<128xf32>
    %33 = vector.shape_cast %32 : vector<128xf32> to vector<1x128xf32>
    %cst_18 = arith.constant 1.250000e-01 : f32
    %34 = vector.broadcast %cst_18 : f32 to vector<1x128xf32>
    %35 = arith.mulf %33, %34 : vector<1x128xf32>
    %36 = arith.mulf %31, %31 : vector<8x128xf32>
    %cst_19 = arith.constant dense<0.000000e+00> : vector<128xf32>
    %37 = vector.multi_reduction <add>, %36, %cst_19 [0] : vector<8x128xf32> to vector<128xf32>
    %38 = vector.shape_cast %37 : vector<128xf32> to vector<1x128xf32>
    %cst_20 = arith.constant 1.250000e-01 : f32
    %39 = vector.broadcast %cst_20 : f32 to vector<1x128xf32>
    %40 = arith.mulf %38, %39 : vector<1x128xf32>
    %41 = arith.mulf %35, %35 : vector<1x128xf32>
    %42 = arith.subf %40, %41 : vector<1x128xf32>
    %cst_21 = arith.constant 0.000000e+00 : f32
    %43 = vector.broadcast %cst_21 : f32 to vector<1x128xf32>
    %44 = arith.maximumf %42, %43 : vector<1x128xf32>
    %c0_22 = arith.constant 0 : index
    %c0_23 = arith.constant 0 : index
    %45 = vector.load %arg5[%c0_22, %c0_23] : memref<1x128xf32, #tpu.memory_space<vmem>>, vector<1x128xf32>
    %cst_24 = arith.constant 9.99999974E-6 : f32
    %46 = vector.broadcast %cst_24 : f32 to vector<1x128xf32>
    %47 = arith.addf %44, %46 : vector<1x128xf32>
    %48 = math.rsqrt %47 : vector<1x128xf32>
    %49 = arith.mulf %45, %48 : vector<1x128xf32>
    %c0_25 = arith.constant 0 : index
    %c0_26 = arith.constant 0 : index
    %50 = vector.load %arg6[%c0_25, %c0_26] : memref<1x128xf32, #tpu.memory_space<vmem>>, vector<1x128xf32>
    %51 = arith.mulf %35, %49 : vector<1x128xf32>
    %52 = arith.subf %50, %51 : vector<1x128xf32>
    %53 = vector.broadcast %49 : vector<1x128xf32> to vector<8x128xf32>
    %54 = arith.mulf %31, %53 : vector<8x128xf32>
    %55 = vector.broadcast %52 : vector<1x128xf32> to vector<8x128xf32>
    %56 = arith.addf %54, %55 : vector<8x128xf32>
    %cst_27 = arith.constant 0.000000e+00 : f32
    %57 = vector.broadcast %cst_27 : f32 to vector<8x128xf32>
    %58 = arith.maximumf %56, %57 : vector<8x128xf32>
    %c0_28 = arith.constant 0 : index
    %c0_29 = arith.constant 0 : index
    %59 = vector.load %arg7[%c0_28, %c0_29] : memref<128x128xf32, #tpu.memory_space<vmem>>, vector<128x128xf32>
    %cst_30 = arith.constant dense<0.000000e+00> : vector<8x128xf32>
    %60 = tpu.matmul %58, %59, %cst_30 {dimension_numbers = #tpu.dot_dimension_numbers<[1], [0], [0], [1], [0, 0, 1, 1], [], []>} : vector<8x128xf32>, vector<128x128xf32>, vector<8x128xf32> -> vector<8x128xf32>
    %c0_31 = arith.constant 0 : index
    %c0_32 = arith.constant 0 : index
    %61 = vector.load %arg8[%c0_31, %c0_32] : memref<1x128xf32, #tpu.memory_space<vmem>>, vector<1x128xf32>
    %62 = vector.broadcast %61 : vector<1x128xf32> to vector<8x128xf32>
    %63 = arith.addf %60, %62 : vector<8x128xf32>
    %c0_33 = arith.constant 0 : index
    %c0_34 = arith.constant 0 : index
    %64 = vector.load %arg9[%c0_33, %c0_34] : memref<8x128xf32, #tpu.memory_space<vmem>>, vector<8x128xf32>
    tpu.vector_store %arg9[%c0_33, %c0_34], %63 {strides = array<i32>} : memref<8x128xf32, #tpu.memory_space<vmem>>, vector<8x128xf32>,
    return
  }
}

</mosaic_0001>

<bundles_post_ra>
// kernel: mlp_forward.1
= control target key start
LH: loop header
LB: loop body
LE: loop exit
PB: predicated region body
PF: predicated region fallthrough
CT: control target
= control target key end

     0   :  { %14 = vsyncpa [#allocation3], 0  ;;  %s947_s0 = inlined_call_operand.vmem [shape: f32[8,128], index: 0, kind: input, shape index: {}]   ;;  %s948_s1 = inlined_call_operand.hbm [shape: f32[128,128], index: 1, kind: input, shape index: {}]   ;;  %s949_s2 = inlined_call_operand.vmem [shape: f32[1,128], index: 2, kind: input, shape index: {}]   ;;  %s950_s3 = inlined_call_operand.vmem [shape: f32[1,128], index: 3, kind: input, shape index: {}]   ;;  %s951_s4 = inlined_call_operand.hbm [shape: f32[128,128], index: 4, kind: input, shape index: {}]   ;;  %s952_s5 = inlined_call_operand.vmem [shape: f32[1,128], index: 5, kind: input, shape index: {}]   ;;  %s953_s6 = inlined_call_operand.vmem [shape: f32[1,128], index: 6, kind: input, shape index: {}]   ;;  %s954_s7 = inlined_call_operand.hbm [shape: f32[128,128], index: 7, kind: input, shape index: {}]   ;;  %s955_s8 = inlined_call_operand.vmem [shape: f32[1,128], index: 8, kind: input, shape index: {}]   ;;  %s956_s9 = inlined_call_operand.hbm [shape: f32[8,128], index: 9, kind: output, shape index: {}]  }
   0x1   :  { %15 = vsyncpa [#allocation6], 0 }
   0x2   :  { %16 = vsyncpa [#allocation4], 0  ;;  %s773_s30 = smov [#allocation5]   ;;  %s774_s11 = smov [#allocation2]  }
   0x3   :  { %s40_s10 = sshll.u32 %s773_s30, 4  ;;  %s24_s12 = sshll.u32 %s774_s11, 4  ;;  %s41_s10 = int_to_ptr.vmem [resolvable:$true] %s40_s10  ;;  %s832_s12 = int_to_ptr.vmem [resolvable:$true] %s24_s12 }
   0x4   :  { %s679_s15 = scalar_lea.hbm %s951_s4, 2048 }
   0x5   :  { %p680_p0 = scmp.ne.s32.totalorder %s951_s4, %s679_s15  ;;  %p683_p1 = scmp.lt.u32.totalorder %s679_s15, %s951_s4 }
   0x7   :  { %p685_p2 = pnand %p683_p1, %p680_p0 }
   0x9   :  { %688 = shalt.err (!%p685_p2)
}
   0xa   :  { %s689_s20 = scalar_lea.vmem %s41_s10, 2048  ;;  %p694_p4 = scmp.lt.s32.totalorder %s41_s10, %s41_s10 }
   0xb   :  { %p690_p3 = scmp.ne.s32.totalorder %s41_s10, %s689_s20  ;;  %p695_p5 = scmp.lt.s32.totalorder %s689_s20, %s689_s20 }
   0xd   :  { %p696_p6 = por %p695_p5, %p694_p4 }
   0xf   :  { %p697_p7 = pnand %p696_p6, %p690_p3 }
  0x11   :  { %700 = shalt.err (!%p697_p7)
}
  0x12   :  { %s775_s21 = smov 128   ;;  %s776_s22 = smov 8  }
  0x13   :  { %46 = dma.hbm_to_vmem [thread:$0]  %s951_s4, 2048, %s41_s10, [#allocation6], %s775_s21, %s775_s21, %s776_s22  }
  0x14   :  { %s701_s27 = scalar_lea.hbm %s948_s1, 2048 }
  0x15   :  { %p702_p8 = scmp.ne.s32.totalorder %s948_s1, %s701_s27  ;;  %p705_p9 = scmp.lt.u32.totalorder %s701_s27, %s948_s1 }
  0x17   :  { %p707_p10 = pnand %p705_p9, %p702_p8 }
  0x19   :  { %710 = shalt.err (!%p707_p10)
}
  0x1a   :  { %s711_s13 = scalar_lea.vmem %s832_s12, 2048  ;;  %p716_p12 = scmp.lt.s32.totalorder %s832_s12, %s832_s12 }
  0x1b   :  { %p712_p11 = scmp.ne.s32.totalorder %s832_s12, %s711_s13  ;;  %p717_p13 = scmp.lt.s32.totalorder %s711_s13, %s711_s13 }
  0x1d   :  { %p718_p0 = por %p717_p13, %p716_p12 }
  0x1f   :  { %p719_p1 = pnand %p718_p0, %p712_p11 }
  0x21   :  { %722 = shalt.err (!%p719_p1)
}
  0x22   :  { %30 = dma.hbm_to_vmem [thread:$0]  %s948_s1, 2048, %s832_s12, [#allocation3], %s775_s21, %s775_s21, %s776_s22  }
  0x23   :  { %s777_s14 = smov [#allocation7]   ;;  %s723_s18 = scalar_lea.hbm %s954_s7, 2048 }
  0x24   :  { %s56_s15 = sshll.u32 %s777_s14, 4  ;;  %p724_p2 = scmp.ne.s32.totalorder %s954_s7, %s723_s18  ;;  %s57_s15 = int_to_ptr.vmem [resolvable:$true] %s56_s15 }
  0x25   :  { %p727_p3 = scmp.lt.u32.totalorder %s723_s18, %s954_s7 }
  0x27   :  { %p729_p4 = pnand %p727_p3, %p724_p2 }
  0x29   :  { %732 = shalt.err (!%p729_p4)
}
  0x2a   :  { %s733_s25 = scalar_lea.vmem %s57_s15, 2048  ;;  %p738_p6 = scmp.lt.s32.totalorder %s57_s15, %s57_s15 }
  0x2b   :  { %p734_p5 = scmp.ne.s32.totalorder %s57_s15, %s733_s25  ;;  %p739_p7 = scmp.lt.s32.totalorder %s733_s25, %s733_s25 }
  0x2d   :  { %p740_p8 = por %p739_p7, %p738_p6 }
  0x2f   :  { %p741_p9 = pnand %p740_p8, %p734_p5 }
  0x31   :  { %744 = shalt.err (!%p741_p9)
}
  0x32   :  { %62 = dma.hbm_to_vmem [thread:$0]  %s954_s7, 2048, %s57_s15, [#allocation6], %s775_s21, %s775_s21, %s776_s22  }
  0x33   :  { %767 = dma.done.wait [#allocation3], 2048  }
  0x34   :  { %768 = vsyncadd [#allocation3], 4294965248 }
  0x35   :  { %769 = dma.done.wait [#allocation6], 4096  }
  0x36   :  { %770 = vsyncadd [#allocation6], 4294963200  ;;  %v778_v0 = vmov 0.0|0.0   ;;  %vm779_vm0 = vmmov 0   ;;  %v780_v1 = vmov 0.0   ;;  %v75_v2 = vld [vmem:[#allocation2] sm:$0xff] }
  0x37   :  { %594 = vmatprep.subr.bf16.mxu0 %v778_v0  ;;  %521 = vmatprep.mubr.msk.f32.mxu0 %vm779_vm0, %v780_v1  ;;  %v76_v3 = vld [vmem:[#allocation2 + $0x8] sm:$0xff]  ;;  %v77_v4 = vld [vmem:[#allocation2 + $0x10] sm:$0xff]  ;;  %v78_v6 = vld [vmem:[#allocation2 + $0x18] sm:$0xff] }
  0x38   :  { %618 = vmatprep.subr.bf16.mxu1 %v778_v0  ;;  %556 = vmatprep.mubr.msk.f32.mxu1 %vm779_vm0, %v780_v1  ;;  %v595_v5 = vpack.c.bf16 %v76_v3, %v75_v2  ;;  %v598_v7 = vpack.c.bf16 %v78_v6, %v77_v4  ;;  %v79_v8 = vld [vmem:[#allocation2 + $0x20] sm:$0xff]  ;;  %v80_v9 = vld [vmem:[#allocation2 + $0x28] sm:$0xff]  ;;  %v81_v11 = vld [vmem:[#allocation2 + $0x30] sm:$0xff] }
  0x39   :  { %v601_v10 = vpack.c.bf16 %v80_v9, %v79_v8  ;;  %v82_v12 = vld [vmem:[#allocation2 + $0x38] sm:$0xff]  ;;  %v83_v14 = vld [vmem:[#allocation2 + $0x40] sm:$0xff]  ;;  %v84_v15 = vld [vmem:[#allocation2 + $0x48] sm:$0xff]  ;;  %v187_v9 = vlaneseq }
  0x3a   :  { %596 = vmatpush3.bf16.msra.mxu0 %v595_v5  ;;  %v604_v13 = vpack.c.bf16 %v82_v12, %v81_v11  ;;  %v607_v16 = vpack.c.bf16 %v84_v15, %v83_v14  ;;  %v85_v17 = vld [vmem:[#allocation2 + $0x50] sm:$0xff]  ;;  %v86_v18 = vld [vmem:[#allocation2 + $0x58] sm:$0xff]  ;;  %v87_v20 = vld [vmem:[#allocation2 + $0x60] sm:$0xff] }
  0x3b   :  { %597 = vmatprep.subr.bf16.mxu0 %v778_v0  ;;  %v610_v19 = vpack.c.bf16 %v86_v18, %v85_v17  ;;  %v88_v21 = vld [vmem:[#allocation2 + $0x68] sm:$0xff]  ;;  %v89_v23 = vld [vmem:[#allocation2 + $0x70] sm:$0xff]  ;;  %v90_v24 = vld [vmem:[#allocation2 + $0x78] sm:$0xff] }
  0x3c   :  { %v613_v22 = vpack.c.bf16 %v88_v21, %v87_v20  ;;  %v616_v25 = vpack.c.bf16 %v90_v24, %v89_v23  ;;  %v74_v26 = vld [vmem:[%s947_s0] sm:$0xff]  ;;  %v202_v28 = vld [vmem:[#allocation5 + $0x8] sm:$0xff]  ;;  %v203_v30 = vld [vmem:[#allocation5 + $0x10] sm:$0xff] }
  0x3d   :  { %v201_v27 = vld [vmem:[#allocation5] sm:$0xff]  ;;  %v204_v31 = vld [vmem:[#allocation5 + $0x18] sm:$0xff]  ;;  %v206_v34 = vld [vmem:[#allocation5 + $0x28] sm:$0xff] }
  0x3e   :  { %599 = vmatpush3.bf16.msra.mxu0 %v598_v7  ;;  %v619_v29 = vpack.c.bf16 %v202_v28, %v201_v27  ;;  %v622_v32 = vpack.c.bf16 %v204_v31, %v203_v30  ;;  %v205_v33 = vld [vmem:[#allocation5 + $0x20] sm:$0xff]  ;;  %v207_v36 = vld [vmem:[#allocation5 + $0x30] sm:$0xff]  ;;  %v208_v37 = vld [vmem:[#allocation5 + $0x38] sm:$0xff] }
  0x3f   :  { %600 = vmatprep.subr.bf16.mxu0 %v778_v0  ;;  %v625_v35 = vpack.c.bf16 %v206_v34, %v205_v33  ;;  %v628_v38 = vpack.c.bf16 %v208_v37, %v207_v36  ;;  %v209_v39 = vld [vmem:[#allocation5 + $0x40] sm:$0xff]  ;;  %v210_v40 = vld [vmem:[#allocation5 + $0x48] sm:$0xff]  ;;  %v211_v42 = vld [vmem:[#allocation5 + $0x50] sm:$0xff] }
  0x40   :  { %620 = vmatpush3.bf16.msra.mxu1 %v619_v29  ;;  %v631_v41 = vpack.c.bf16 %v210_v40, %v209_v39  ;;  %v212_v43 = vld [vmem:[#allocation5 + $0x58] sm:$0xff]  ;;  %v213_v45 = vld [vmem:[#allocation5 + $0x60] sm:$0xff]  ;;  %v214_v46 = vld [vmem:[#allocation5 + $0x68] sm:$0xff] }
  0x41   :  { %621 = vmatprep.subr.bf16.mxu1 %v778_v0  ;;  %v634_v44 = vpack.c.bf16 %v212_v43, %v211_v42  ;;  %v637_v47 = vpack.c.bf16 %v214_v46, %v213_v45  ;;  %v215_v48 = vld [vmem:[#allocation5 + $0x70] sm:$0xff]  ;;  %v216_v49 = vld [vmem:[#allocation5 + $0x78] sm:$0xff]  ;;  %v179_v11 = vld [vmem:[%s949_s2] sm:$0x1] }
  0x42   :  { %602 = vmatpush3.bf16.msra.mxu0 %v601_v10  ;;  %v640_v50 = vpack.c.bf16 %v216_v49, %v215_v48  ;;  %v188_v10 = vshrl.u32 %v187_v9, 7  ;;  %v183_v15 = vld [vmem:[%s950_s3] sm:$0x1]  ;;  %v328_v24 = vld [vmem:[#allocation7 + $0x8] sm:$0xff]  ;;  %v330_v27 = vld [vmem:[#allocation7 + $0x18] sm:$0xff] }
  0x43   :  { %603 = vmatprep.subr.bf16.mxu0 %v778_v0  ;;  %v327_v23 = vld [vmem:[#allocation7] sm:$0xff]  ;;  %v332_v30 = vld [vmem:[#allocation7 + $0x28] sm:$0xff]  ;;  %v334_v33 = vld [vmem:[#allocation7 + $0x38] sm:$0xff] }
  0x44   :  { %623 = vmatpush3.bf16.msra.mxu1 %v622_v32  ;;  %v910_v12 = vsub.s32 0, %v188_v10  ;;  %v331_v29 = vld [vmem:[#allocation7 + $0x20] sm:$0xff]  ;;  %v333_v32 = vld [vmem:[#allocation7 + $0x30] sm:$0xff]  ;;  %v336_v36 = vld [vmem:[#allocation7 + $0x48] sm:$0xff] }
  0x45   :  { %624 = vmatprep.subr.bf16.mxu1 %v778_v0  ;;  %v649_v31 = vpack.c.bf16 %v332_v30, %v331_v29  ;;  %v652_v34 = vpack.c.bf16 %v334_v33, %v333_v32  ;;  %v338_v39 = vld [vmem:[#allocation7 + $0x58] sm:$0xff]  ;;  %v340_v42 = vld [vmem:[#allocation7 + $0x68] sm:$0xff] }
  0x46   :  { %605 = vmatpush3.bf16.msra.mxu0 %v604_v13  ;;  %v342_v45 = vld [vmem:[#allocation7 + $0x78] sm:$0xff] }
  0x47   :  { %606 = vmatprep.subr.bf16.mxu0 %v778_v0 }
  0x48   :  { %626 = vmatpush3.bf16.msra.mxu1 %v625_v35  ;;  %v335_v35 = vld [vmem:[#allocation7 + $0x40] sm:$0xff] }
  0x49   :  { %627 = vmatprep.subr.bf16.mxu1 %v778_v0  ;;  %v655_v37 = vpack.c.bf16 %v336_v36, %v335_v35 }
  0x4a   :  { %608 = vmatpush3.bf16.msra.mxu0 %v607_v16 }
  0x4b   :  { %609 = vmatprep.subr.bf16.mxu0 %v778_v0 }
  0x4c   :  { %629 = vmatpush3.bf16.msra.mxu1 %v628_v38  ;;  %v337_v38 = vld [vmem:[#allocation7 + $0x50] sm:$0xff] }
  0x4d   :  { %630 = vmatprep.subr.bf16.mxu1 %v778_v0  ;;  %v658_v40 = vpack.c.bf16 %v338_v39, %v337_v38 }
  0x4e   :  { %611 = vmatpush3.bf16.msra.mxu0 %v610_v19 }
  0x4f   :  { %612 = vmatprep.subr.bf16.mxu0 %v778_v0 }
  0x50   :  { %632 = vmatpush3.bf16.msra.mxu1 %v631_v41  ;;  %v339_v41 = vld [vmem:[#allocation7 + $0x60] sm:$0xff] }
  0x51   :  { %633 = vmatprep.subr.bf16.mxu1 %v778_v0  ;;  %v661_v43 = vpack.c.bf16 %v340_v42, %v339_v41 }
  0x52   :  { %614 = vmatpush3.bf16.msra.mxu0 %v613_v22 }
  0x53   :  { %615 = vmatprep.subr.bf16.mxu0 %v778_v0 }
  0x54   :  { %635 = vmatpush3.bf16.msra.mxu1 %v634_v44  ;;  %v341_v44 = vld [vmem:[#allocation7 + $0x70] sm:$0xff] }
  0x55   :  { %636 = vmatprep.subr.bf16.mxu1 %v778_v0  ;;  %v664_v46 = vpack.c.bf16 %v342_v45, %v341_v44 }
  0x56   :  { %617 = vmatpush3.bf16.msra.mxu0 %v616_v25  ;;  %v643_v25 = vpack.c.bf16 %v328_v24, %v327_v23 }
  0x57   :  { %642 = vmatprep.subr.bf16.mxu0 %v778_v0 }
  0x58   :  { %638 = vmatpush3.bf16.msra.mxu1 %v637_v47 }
  0x59   :  { %522 = vmatmul.mubr.f32.vlgmr.msra.gmra.mrb[0].mxu0 %v74_v26  ;;  %639 = vmatprep.subr.bf16.mxu1 %v778_v0  ;;  %v329_v26 = vld [vmem:[#allocation7 + $0x10] sm:$0xff] }
  0x5a   :  { %591 = vmatprep.mubr.msk.f32.mxu0 %vm779_vm0, %v780_v1  ;;  %644 = vmatpush3.bf16.msra.mxu0 %v643_v25  ;;  %v646_v28 = vpack.c.bf16 %v330_v27, %v329_v26 }
  0x5b   :  { %645 = vmatprep.subr.bf16.mxu0 %v778_v0 }
  0x5c   :  { %641 = vmatpush3.bf16.msra.mxu1 %v640_v50 }
  0x5e   :  { %647 = vmatpush3.bf16.msra.mxu0 %v646_v28 }
  0x5f   :  { %648 = vmatprep.subr.bf16.mxu0 %v778_v0 }
  0x62   :  { %650 = vmatpush3.bf16.msra.mxu0 %v649_v31 }
  0x63   :  { %651 = vmatprep.subr.bf16.mxu0 %v778_v0 }
  0x66   :  { %653 = vmatpush3.bf16.msra.mxu0 %v652_v34 }
  0x67   :  { %654 = vmatprep.subr.bf16.mxu0 %v778_v0 }
  0x6a   :  { %656 = vmatpush3.bf16.msra.mxu0 %v655_v37 }
  0x6b   :  { %657 = vmatprep.subr.bf16.mxu0 %v778_v0 }
  0x6e   :  { %659 = vmatpush3.bf16.msra.mxu0 %v658_v40 }
  0x6f   :  { %660 = vmatprep.subr.bf16.mxu0 %v778_v0 }
  0x72   :  { %662 = vmatpush3.bf16.msra.mxu0 %v661_v43 }
  0x73   :  { %663 = vmatprep.subr.bf16.mxu0 %v778_v0 }
  0x76   :  { %665 = vmatpush3.bf16.msra.mxu0 %v664_v46 }
 0x12c   :  { %v157_v51 = vpop.f32.mrb[0].mxu0 }
 0x12d   :  { %v161_v52 = vrot.slane %v157_v51, 4  ;;  %v168_v53 = vmul.f32 %v157_v51, %v157_v51  ;;  %v523_v54 = vpop.f32.mrb[1].mxu0 }
 0x12f   :  { %v162_v55 = vadd.f32 %v161_v52, %v157_v51  ;;  %v169_v56 = vrot.slane %v168_v53, 4 }
 0x131   :  { %v163_v57 = vrot.slane %v162_v55, 2  ;;  %v170_v58 = vadd.f32 %v169_v56, %v168_v53 }
 0x133   :  { %v164_v59 = vadd.f32 %v163_v57, %v162_v55  ;;  %v171_v60 = vrot.slane %v170_v58, 2 }
 0x135   :  { %v165_v61 = vrot.slane %v164_v59, 1  ;;  %v172_v62 = vadd.f32 %v171_v60, %v170_v58 }
 0x137   :  { %v166_v63 = vadd.f32 %v165_v61, %v164_v59  ;;  %v173_v1 = vrot.slane %v172_v62, 1 }
 0x139   :  { %v167_v2 = vmul.f32 0.125, %v166_v63  ;;  %v174_v3 = vadd.f32 %v173_v1, %v172_v62 }
 0x13b   :  { %v175_v4 = vmul.f32 0.125, %v174_v3  ;;  %v176_v5 = vmul.f32 %v167_v2, %v167_v2 }
 0x13d   :  { %v177_v6 = vsub.f32 %v175_v4, %v176_v5  ;;  %v305_v4 = vld [vmem:[%s952_s5] sm:$0x1]  ;;  %s781_s5 = smov [#allocation8]  }
 0x13e   :  { %s427_s13 = sshll.u32 %s781_s5, 4  ;;  %s428_s13 = int_to_ptr.vmem [resolvable:$true] %s427_s13 }
 0x13f   :  { %v178_v7 = vmax.f32 %v177_v6, 0.0  ;;  %p750_p11 = scmp.lt.s32.totalorder %s428_s13, %s428_s13 }
 0x141   :  { %v180_v8 = vadd.f32 1e-05, %v178_v7  ;;  %v309_v7 = vld [vmem:[%s953_s6] sm:$0x1]  ;;  %s745_s6 = scalar_lea.vmem %s428_s13, 128 }
 0x142   :  { %p746_p10 = scmp.ne.s32.totalorder %s428_s13, %s745_s6  ;;  %p751_p12 = scmp.lt.s32.totalorder %s745_s6, %s745_s6 }
 0x143   :  { %675 = vrsqrt.f32 %v180_v8 }
 0x144   :  { %p752_p13 = por %p751_p12, %p750_p11 }
 0x146   :  { %p753_p0 = pnand %p752_p13, %p746_p10 }
 0x14d   :  { %v676_v13 = vpop.eup %675 }
 0x14e   :  { %v182_v14 = vmul.f32 %v676_v13, %v179_v11 }
 0x150   :  { %v190_v16 = vrot.slane %v182_v14, %v910_v12  ;;  %v184_v17 = vmul.f32 %v182_v14, %v167_v2 }
 0x152   :  { %v185_v18 = vsub.f32 %v183_v15, %v184_v17  ;;  %v192_v19 = vmul.f32 %v190_v16, %v157_v51  ;;  %v437_v16 = vld [vmem:[%s955_s8] ss:$0 sm:$0xff] }
 0x154   :  { %v197_v20 = vrot.slane %v185_v18, %v910_v12 }
 0x156   :  { %v199_v21 = vadd.f32 %v197_v20, %v192_v19 }
 0x158   :  { %v200_v22 = vmax.f32 %v199_v21, 0.0 }
 0x15a   :  { %557 = vmatmul.mubr.f32.vlgmr.msra.gmra.mrb[0].mxu1 %v200_v22 }
 0x22d   :  { %v283_v47 = vpop.f32.mrb[0].mxu1 }
 0x22e   :  { %v287_v48 = vrot.slane %v283_v47, 4  ;;  %v294_v49 = vmul.f32 %v283_v47, %v283_v47  ;;  %v558_v50 = vpop.f32.mrb[1].mxu1 }
 0x230   :  { %v288_v51 = vadd.f32 %v287_v48, %v283_v47  ;;  %v295_v52 = vrot.slane %v294_v49, 4 }
 0x232   :  { %v289_v53 = vrot.slane %v288_v51, 2  ;;  %v296_v54 = vadd.f32 %v295_v52, %v294_v49 }
 0x234   :  { %v290_v55 = vadd.f32 %v289_v53, %v288_v51  ;;  %v297_v56 = vrot.slane %v296_v54, 2 }
 0x236   :  { %v291_v57 = vrot.slane %v290_v55, 1  ;;  %v298_v58 = vadd.f32 %v297_v56, %v296_v54 }
 0x238   :  { %v292_v59 = vadd.f32 %v291_v57, %v290_v55  ;;  %v299_v60 = vrot.slane %v298_v58, 1 }
 0x23a   :  { %v293_v61 = vmul.f32 0.125, %v292_v59  ;;  %v300_v0 = vadd.f32 %v299_v60, %v298_v58 }
 0x23c   :  { %v301_v62 = vmul.f32 0.125, %v300_v0  ;;  %v302_v63 = vmul.f32 %v293_v61, %v293_v61 }
 0x23e   :  { %v303_v1 = vsub.f32 %v301_v62, %v302_v63 }
 0x240   :  { %v304_v2 = vmax.f32 %v303_v1, 0.0 }
 0x242   :  { %v306_v3 = vadd.f32 1e-05, %v304_v2 }
 0x244   :  { %677 = vrsqrt.f32 %v306_v3 }
 0x24e   :  { %v678_v5 = vpop.eup %677 }
 0x24f   :  { %v308_v6 = vmul.f32 %v678_v5, %v305_v4 }
 0x251   :  { %v310_v8 = vmul.f32 %v308_v6, %v293_v61  ;;  %v316_v9 = vrot.slane %v308_v6, %v910_v12 }
 0x253   :  { %v311_v10 = vsub.f32 %v309_v7, %v310_v8  ;;  %v318_v11 = vmul.f32 %v316_v9, %v283_v47 }
 0x255   :  { %v323_v13 = vrot.slane %v311_v10, %v910_v12 }
 0x257   :  { %v325_v14 = vadd.f32 %v323_v13, %v318_v11 }
 0x259   :  { %v326_v15 = vmax.f32 %v325_v14, 0.0 }
 0x25b   :  { %592 = vmatmul.mubr.f32.vlgmr.msra.gmra.mrb[2].mxu0 %v326_v15 }
 0x32e   :  { %v416_v17 = vpop.f32.mrb[2].mxu0 }
 0x32f   :  { %v417_v18 = vadd.f32 %v437_v16, %v416_v17  ;;  %v593_v19 = vpop.f32.mrb[3].mxu0 }
 0x331   :  { %420 = vst [vmem:[#allocation8] sm:$0xff] %v417_v18 }
 0x332   :  { %756 = shalt.err (!%p753_p0)
}
 0x333   :  { %s757_s14 = scalar_lea.hbm %s956_s9, 128 }
 0x334   :  { %p758_p1 = scmp.ne.s32.totalorder %s956_s9, %s757_s14  ;;  %p761_p2 = scmp.lt.u32.totalorder %s757_s14, %s956_s9 }
 0x336   :  { %p763_p3 = pnand %p761_p2, %p758_p1 }
 0x338   :  { %766 = shalt.err (!%p763_p3)
}
 0x339   :  { %430 = dma.vmem_to_hbm [thread:$0]  %s428_s13, 128, %s956_s9, [#allocation4]  }
 0x33a   :  { %771 = dma.done.wait [#allocation4], 128  }
 0x33b   :  { %772 = vsyncadd [#allocation4], 4294967168 }
 0x33c   :  { %434 = vsyncpa [#allocation3], 1 }
 0x33d   :  { %435 = vsyncpa [#allocation6], 1 }
 0x33e   :  { %436 = vsyncpa [#allocation4], 1 }

</bundles_post_ra>
